<compile_context>
chip_gen: v7x
topology: tpu7x:2x2x1
jax: 0.10.0
libtpu: 0.0.40
codegen_flags: <defaults>
</compile_context>

<pallas_src>
import math
from functools import partial

import numpy as np
import jax
import jax.numpy as jnp
from jax import lax
from jax.experimental import pallas as pl
from jax.experimental.pallas import tpu as pltpu

# 1-D taps for kernel='linear': 2 * [1/8, 3/8, 3/8, 1/8].
_K1D = (0.25, 0.75, 0.75, 0.25)

_VMEM_LIMIT_BYTES = 48 << 20     # < v7x 64 MiB/TC; far below v5e/v6e 128 MiB physical
_BLOCK_BUDGET_BYTES = 6 << 20    # (input + output) bytes per grid step


def _col_matrix(W):
    """Constant (W, 2W) matrix: column reflect-pad + column taps + phase interleave."""
    k0, k1, k2, k3 = _K1D
    # Mc maps a reflect-padded row vp (length W+2) to the 2W upsampled columns:
    #   out[2n]   = k3*vp[n]   + k1*vp[n+1]
    #   out[2n+1] = k2*vp[n+1] + k0*vp[n+2]
    Mc = np.zeros((W + 2, 2 * W), dtype=np.float64)
    n = np.arange(W)
    Mc[n, 2 * n] = k3
    Mc[n + 1, 2 * n] = k1
    Mc[n + 1, 2 * n + 1] = k2
    Mc[n + 2, 2 * n + 1] = k0
    # P folds the 1-px reflect pad:  vp = P @ v,  P: (W+2, W), reflect (not edge).
    P = np.zeros((W + 2, W), dtype=np.float64)
    P[np.arange(1, W + 1), np.arange(W)] = 1.0
    P[0, 1] = 1.0
    P[W + 1, W - 2] = 1.0
    return P.T @ Mc  # (W, 2W), float64; caller picks the dtype


def _pick_tb(B, H, W, itemsize):
    """Planes per grid step.

    Targets ~6 MiB of (input + output) per step — on the HBM roofline for all of
    v5e/v6e/v7x — while keeping double-buffered in/out blocks plus in-kernel f32
    temporaries well under the requested 48 MiB VMEM limit.  Keeps >=4 grid blocks
    when B allows (2 TensorCores x >=2 pipelined steps on v7x) and aligns TB*H to
    the dtype's sublane packing.
    """
    itemsize = int(itemsize)
    plane_bytes = 5 * H * W * itemsize                 # 1x input rows + 4x output rows
    tb = max(1, _BLOCK_BUDGET_BYTES // plane_bytes)
    tb = min(tb, max(1, B // 4), B)                    # >=4 blocks when possible (megacore)
    sub = {4: 8, 2: 16, 1: 32}.get(itemsize, 8)        # sublane packing for this dtype
    step = sub // math.gcd(H, sub)                     # smallest tb with (tb*H) % sub == 0
    tb_aligned = (tb // step) * step
    if tb_aligned == 0:
        tb_aligned = step                              # smallest aligned block, not B
    if tb_aligned > B:
        tb_aligned = B                                 # full-array block: exempt from (8,128)
    return tb_aligned


def _make_kernel(H, W, mm_dtype):
    k0, k1, k2, k3 = (float(v) for v in _K1D)

    def kernel(x_ref, b_ref, o_ref):
        # x_ref: (TBH, W)   flattened (plane, row) x columns; TBH is a multiple of H
        # b_ref: (W, 2W)    constant column matrix (single-buffered)
        # o_ref: (TBH, 4W)  [even output row | odd output row] per input row
        tbh = x_ref.shape[0]
        x = x_ref[...].astype(jnp.float32)

        # Row index within its plane.  Blocks start on plane boundaries and hold whole
        # planes, so the local row index mod H equals the global row index mod H.
        rid = lax.broadcasted_iota(jnp.int32, (tbh, W), 0)
        row = rid % H
        first = row == 0
        last = row == (H - 1)

        # Neighbor rows via XLU sublane rotate (no extra VMEM copies).  The wrap rows
        # (block first/last row) coincide with plane boundaries, where the reflect
        # selects below override them, so the wrapped data is never used.
        prev = pltpu.roll(x, 1, axis=0)          # prev[r] ~ x[r-1]
        nxt = pltpu.roll(x, tbh - 1, axis=0)     # nxt[r]  ~ x[r+1]

        # Reflect padding along rows: row -1 -> row 1, row H -> row H-2 (per plane).
        x_up = jnp.where(first, nxt, prev)
        x_dn = jnp.where(last, prev, nxt)

        # Row (transposed-conv) pass: even / odd output-row phases (VPU, f32).
        even_mid = k3 * x_up + k1 * x            # output rows 2m
        odd_mid = k2 * x + k0 * x_dn             # output rows 2m+1

        # Column pass: reflect pad + taps + even/odd column interleave in one matmul.
        bmat = b_ref[...]
        even_out = jnp.dot(even_mid.astype(mm_dtype), bmat,
                           preferred_element_type=jnp.float32)
        odd_out = jnp.dot(odd_mid.astype(mm_dtype), bmat,
                          preferred_element_type=jnp.float32)

        o_ref[:, : 2 * W] = even_out.astype(o_ref.dtype)
        o_ref[:, 2 * W:] = odd_out.astype(o_ref.dtype)

    return kernel


@partial(jax.jit, static_argnames=("kernel", "pad_mode"))
def upsample2d(x, kernel="linear", pad_mode="reflect"):
    """x: (N, C, H, W) -> (N, C, 2H, 2W); matches Upsample2d('linear', 'reflect')."""
    if kernel != "linear":
        raise NotImplementedError("only kernel='linear' is implemented")
    if pad_mode != "reflect":
        raise NotImplementedError("only pad_mode='reflect' is implemented")
    N, C, H, W = x.shape
    assert H >= 2 and W >= 2, "reflect padding needs H, W >= 2"
    B = N * C
    itemsize = jnp.dtype(x.dtype).itemsize

    # bf16 inputs: run the matmul in bf16 (f32 accumulate); taps are exact in bf16.
    mm_dtype = jnp.bfloat16 if x.dtype == jnp.bfloat16 else jnp.float32
    bmat = jnp.asarray(_col_matrix(W), dtype=mm_dtype)          # (W, 2W)

    x2 = x.reshape(B * H, W)                                    # free reshape (contiguous)

    TB = _pick_tb(B, H, W, itemsize)
    TBH = TB * H
    num_blocks = pl.cdiv(B, TB)
    # Whole planes per block is load-bearing: the in-kernel reflect masks and the
    # roll wrap rows rely on block boundaries coinciding with plane boundaries.
    assert TBH % H == 0

    cost = pl.CostEstimate(
        flops=int(8 * B * H * W * W + 12 * B * H * W),          # 2 matmuls + row taps
        transcendentals=0,
        bytes_accessed=int(5 * B * H * W * itemsize
                           + bmat.size * jnp.dtype(mm_dtype).itemsize),
    )

    out2 = pl.pallas_call(
        _make_kernel(H, W, mm_dtype),
        out_shape=jax.ShapeDtypeStruct((B * H, 4 * W), x.dtype),
        grid_spec=pltpu.PrefetchScalarGridSpec(
            num_scalar_prefetch=0,
            grid=(num_blocks,),
            in_specs=[
                pl.BlockSpec((TBH, W), lambda i: (i, 0)),
                # Constant matrix: same block every step -> single buffer is enough.
                pl.BlockSpec((W, 2 * W), lambda i: (0, 0),
                             pipeline_mode=pl.Buffered(1)),
            ],
            out_specs=pl.BlockSpec((TBH, 4 * W), lambda i: (i, 0)),
        ),
        compiler_params=pltpu.CompilerParams(
            dimension_semantics=("parallel",),
            vmem_limit_bytes=_VMEM_LIMIT_BYTES,
        ),
        cost_estimate=cost,
    )(x2, bmat)

    # Row r = b*H + m of out2 holds [out[2m, :] | out[2m+1, :]] -> this reshape is
    # layout-preserving (metadata only), no HBM transpose pass.
    return out2.reshape(N, C, 2 * H, 2 * W)


def _reference(x):
    """Plain-JAX reference with the same tap/index math as the PyTorch op."""
    N, C, H, W = x.shape
    k0, k1, k2, k3 = _K1D
    xp = jnp.pad(x, ((0, 0), (0, 0), (1, 1), (1, 1)), mode="reflect")
    r_even = k3 * xp[:, :, 0:H, :] + k1 * xp[:, :, 1:H + 1, :]
    r_odd = k2 * xp[:, :, 1:H + 1, :] + k0 * xp[:, :, 2:H + 2, :]

    def cols(r):
        ce = k3 * r[..., 0:W] + k1 * r[..., 1:W + 1]
        co = k2 * r[..., 1:W + 1] + k0 * r[..., 2:W + 2]
        return jnp.stack([ce, co], axis=-1).reshape(N, C, H, 2 * W)

    even = cols(r_even)
    odd = cols(r_odd)
    return jnp.stack([even, odd], axis=3).reshape(N, C, 2 * H, 2 * W)


if __name__ == "__main__":
    key = jax.random.PRNGKey(0)
    N, C, H, W = 2, 4, 16, 16
    x = jax.random.normal(key, (N, C, H, W), dtype=jnp.float32)

    y = upsample2d(x)
    jax.block_until_ready(y)
    assert y.shape == (N, C, 2 * H, 2 * W), y.shape

    # Check against a plain-JAX reference of the PyTorch op.
    y_ref = _reference(x)
    jax.block_until_ready(y_ref)
    max_err = float(jnp.max(jnp.abs(y - y_ref)))
    assert max_err < 1e-3, max_err

    # Constant input must stay constant (taps per output pixel sum to 1; reflect pad
    # preserves constants).
    y_const = upsample2d(jnp.ones((N, C, H, W), dtype=jnp.float32))
    jax.block_until_ready(y_const)
    assert bool(jnp.allclose(y_const, 1.0, atol=1e-3))

    # bf16 path (bf16 matmul operands, f32 accumulate) stays within a loose tolerance.
    xb = x.astype(jnp.bfloat16)
    yb = upsample2d(xb)
    jax.block_until_ready(yb)
    assert float(jnp.max(jnp.abs(yb.astype(jnp.float32) - y_ref))) < 5e-2

    print("KERNEL_OK")
</pallas_src>

<mosaic_0001>
module attributes {stable_mosaic.version = 11 : i64} {
  func.func @kernel(%arg0: i32, %arg1: memref<32x16xf32, #tpu.memory_space<vmem>>, %arg2: memref<16x32xf32, #tpu.memory_space<vmem>>, %arg3: memref<32x64xf32, #tpu.memory_space<vmem>>) attributes {dimension_semantics = [#tpu.dimension_semantics<parallel>], iteration_bounds = array<i64: 4>, scalar_prefetch = 0 : i64, scratch_operands = 0 : i64, tpu.core_type = #tpu.core_type<tc>, window_params = [{transform_indices = @transform_0, window_bounds = array<i64: 32, 16>}, {pipeline_mode = #tpu.pipeline_mode<synchronous>, transform_indices = @transform_1, window_bounds = array<i64: 16, 32>}, {transform_indices = @transform_2, window_bounds = array<i64: 32, 64>}]} {
    %c0 = arith.constant 0 : index
    %c0_0 = arith.constant 0 : index
    %0 = vector.load %arg1[%c0, %c0_0] : memref<32x16xf32, #tpu.memory_space<vmem>>, vector<32x16xf32>
    %1 = tpu.iota {dimensions = array<i32: 0>} : vector<32x16xi32>
    %c16_i32 = arith.constant 16 : i32
    %c0_i32 = arith.constant 0 : i32
    %2 = arith.cmpi eq, %c16_i32, %c0_i32 : i32
    %c1_i32 = arith.constant 1 : i32
    %3 = arith.select %2, %c1_i32, %c16_i32 : i32
    %4 = vector.broadcast %3 : i32 to vector<32x16xi32>
    %5 = arith.remsi %1, %4 : vector<32x16xi32>
    %c0_i32_1 = arith.constant 0 : i32
    %6 = vector.broadcast %c0_i32_1 : i32 to vector<32x16xi32>
    %7 = arith.cmpi ne, %5, %6 : vector<32x16xi32>
    %c0_i32_2 = arith.constant 0 : i32
    %8 = vector.broadcast %c0_i32_2 : i32 to vector<32x16xi32>
    %9 = arith.cmpi slt, %5, %8 : vector<32x16xi32>
    %c0_i32_3 = arith.constant 0 : i32
    %10 = arith.cmpi slt, %3, %c0_i32_3 : i32
    %11 = vector.broadcast %10 : i1 to vector<32x16xi1>
    %12 = vector.broadcast %11 : vector<32x16xi1> to vector<32x16xi1>
    %13 = arith.xori %9, %12 : vector<32x16xi1>
    %14 = arith.andi %13, %7 : vector<32x16xi1>
    %15 = vector.broadcast %3 : i32 to vector<32x16xi32>
    %16 = arith.addi %5, %15 : vector<32x16xi32>
    %17 = arith.select %14, %16, %5 : vector<32x16xi1>, vector<32x16xi32>
    %c0_i32_4 = arith.constant 0 : i32
    %18 = vector.broadcast %c0_i32_4 : i32 to vector<32x16xi32>
    %19 = arith.cmpi eq, %17, %18 : vector<32x16xi32>
    %c15_i32 = arith.constant 15 : i32
    %20 = vector.broadcast %c15_i32 : i32 to vector<32x16xi32>
    %21 = arith.cmpi eq, %17, %20 : vector<32x16xi32>
    %c1_i32_5 = arith.constant 1 : i32
    %22 = tpu.dynamic_rotate %0 by %c1_i32_5 dim 0 : vector<32x16xf32>, i32 -> vector<32x16xf32>
    %c31_i32 = arith.constant 31 : i32
    %23 = tpu.dynamic_rotate %0 by %c31_i32 dim 0 : vector<32x16xf32>, i32 -> vector<32x16xf32>
    %24 = arith.select %19, %23, %22 : vector<32x16xi1>, vector<32x16xf32>
    %25 = arith.select %21, %22, %23 : vector<32x16xi1>, vector<32x16xf32>
    %cst = arith.constant 2.500000e-01 : f32
    %26 = vector.broadcast %cst : f32 to vector<32x16xf32>
    %27 = arith.mulf %26, %24 : vector<32x16xf32>
    %cst_6 = arith.constant 7.500000e-01 : f32
    %28 = vector.broadcast %cst_6 : f32 to vector<32x16xf32>
    %29 = arith.mulf %28, %0 : vector<32x16xf32>
    %30 = arith.addf %27, %29 : vector<32x16xf32>
    %cst_7 = arith.constant 7.500000e-01 : f32
    %31 = vector.broadcast %cst_7 : f32 to vector<32x16xf32>
    %32 = arith.mulf %31, %0 : vector<32x16xf32>
    %cst_8 = arith.constant 2.500000e-01 : f32
    %33 = vector.broadcast %cst_8 : f32 to vector<32x16xf32>
    %34 = arith.mulf %33, %25 : vector<32x16xf32>
    %35 = arith.addf %32, %34 : vector<32x16xf32>
    %c0_9 = arith.constant 0 : index
    %c0_10 = arith.constant 0 : index
    %36 = vector.load %arg2[%c0_9, %c0_10] : memref<16x32xf32, #tpu.memory_space<vmem>>, vector<16x32xf32>
    %cst_11 = arith.constant dense<0.000000e+00> : vector<32x32xf32>
    %37 = tpu.matmul %30, %36, %cst_11 {dimension_numbers = #tpu.dot_dimension_numbers<[1], [0], [0], [1], [0, 0, 1, 1], [], []>} : vector<32x16xf32>, vector<16x32xf32>, vector<32x32xf32> -> vector<32x32xf32>
    %cst_12 = arith.constant dense<0.000000e+00> : vector<32x32xf32>
    %38 = tpu.matmul %35, %36, %cst_12 {dimension_numbers = #tpu.dot_dimension_numbers<[1], [0], [0], [1], [0, 0, 1, 1], [], []>} : vector<32x16xf32>, vector<16x32xf32>, vector<32x32xf32> -> vector<32x32xf32>
    %c0_13 = arith.constant 0 : index
    %c0_14 = arith.constant 0 : index
    %39 = vector.load %arg3[%c0_13, %c0_14] : memref<32x64xf32, #tpu.memory_space<vmem>>, vector<32x32xf32>
    tpu.vector_store %arg3[%c0_13, %c0_14], %37 {strides = array<i32>} : memref<32x64xf32, #tpu.memory_space<vmem>>, vector<32x32xf32>,
    %c0_15 = arith.constant 0 : index
    %c32 = arith.constant 32 : index
    %40 = vector.load %arg3[%c0_15, %c32] : memref<32x64xf32, #tpu.memory_space<vmem>>, vector<32x32xf32>
    tpu.vector_store %arg3[%c0_15, %c32], %38 {strides = array<i32>} : memref<32x64xf32, #tpu.memory_space<vmem>>, vector<32x32xf32>,
    return
  }
  func.func @transform_0(%arg0: i32) -> (i32, i32) {
    %c0_i32 = arith.constant 0 : i32
    %c0_i32_0 = arith.constant 0 : i32
    return %arg0, %c0_i32 : i32, i32
  }
  func.func @transform_1(%arg0: i32) -> (i32, i32) {
    %c0_i32 = arith.constant 0 : i32
    %c0_i32_0 = arith.constant 0 : i32
    %c0_i32_1 = arith.constant 0 : i32
    return %c0_i32, %c0_i32_0 : i32, i32
  }
  func.func @transform_2(%arg0: i32) -> (i32, i32) {
    %c0_i32 = arith.constant 0 : i32
    %c0_i32_0 = arith.constant 0 : i32
    return %arg0, %c0_i32 : i32, i32
  }
}

</mosaic_0001>

<bundles_post_ra>
// kernel: upsample2d.1
= control target key start
LH: loop header
LB: loop body
LE: loop exit
PB: predicated region body
PF: predicated region fallthrough
CT: control target
= control target key end

     0   :  { %7 = vsyncpa [#allocation3], 0  ;;  %s1012_s0 = inlined_call_operand.hbm [shape: f32[128,16], index: 0, kind: input, shape index: {}]   ;;  %s1013_s1 = inlined_call_operand.hbm [shape: f32[16,32], index: 1, kind: input, shape index: {}]   ;;  %s1014_s2 = inlined_call_operand.vmem [shape: f32[128,64], index: 2, kind: output, shape index: {}]  }
   0x1   :  { %9 = vsyncpa [#allocation3 + $0x1], 0 }
   0x2   :  { %10 = vsyncpa [#allocation5], 0  ;;  %s827_s9 = smov 0   ;;  %s829_s10 = smov 0  }
   0x3   :  { %s831_s11 = smov 0   ;;  %s833_s12 = smov 0  }
   0x4 LB: > { %s592_s13 = sadd.s32 4294967295, %s805_s12   ;;  %p36_p0 = scmp.ne.s32.totalorder %s797_s10, %s793_s9  ;;  %s805_s12 = sphi %s833_s12, %s1036_s12   ;;  %s801_s11 = sphi %s831_s11, %s1035_s11   ;;  %s797_s10 = sphi %s829_s10, %s1034_s10   ;;  %s793_s9 = sphi %s827_s9, %s1033_s9  }
   0x5   : > { %p849_p1 = scmp.eq.s32.totalorder %s592_s13, 0  ;;  %p594_p2 = scmp.ge.s32.totalorder %s805_s12, 1 }
   0x6   : > { %p94_p3 = scmp.lt.s32.totalorder %s805_s12, 5  ;;  %s807_s17 = smov [#allocation4]  }
   0x7   : > { %s1019_s14 = scalar_select %p849_p1, 1, 0 }
   0x8   : > { %p857_p4 = por %p849_p1, %p36_p0  ;;  %p861_p5 = pnand %p594_p2, %p94_p3 }
   0x9   : > { %s106_s18 = sshll.u32 %s807_s17, 4  ;;  %s874_s20 = sadd.s32 1, %s805_s12   ;;  %s107_s18 = int_to_ptr.vmem [resolvable:$true] %s106_s18 }
   0xa   : > { %s1020_s15 = scalar_select %p857_p4, 1, 0 }
   0xb   : > { %s1021_s16 = scalar_select %p861_p5, 1, 0 }
   0xc   : > { %p662_p6 = pneg %p861_p5  ;;  %s23_s21 = sadd.s32 1, %s801_s11 }
   0xd   : > { %s20_s22 = ssub.s32 %s805_s12, %s874_s20  ;;  %s709_s25 = scalar_lea.hbm %s1013_s1, 256 }
   0xe   : > { %p869_p7 = pnand %p662_p6, %p849_p1  ;;  %p710_p8 = scmp.ne.s32.totalorder %s1013_s1, %s709_s25 }
   0xf   : > { %p716_p12 = scmp.lt.u32.totalorder %s709_s25, %s1013_s1 }
  0x10   : > { %p711_p9 = pneg %p869_p7 }
  0x12   : > { %p712_p10 = pnand %p711_p9, %p710_p8 }
  0x14   : > { %p713_p11 = pneg %p712_p10 }
  0x16   : > { %p718_p13 = pnand %p716_p12, %p713_p11 }
  0x18   : > { %721 = shalt.err (!%p718_p13)
}
  0x19   : > { %s722_s30 = scalar_lea.vmem %s107_s18, 256  ;;  %p730_p6 = scmp.lt.s32.totalorder %s107_s18, %s107_s18 }
  0x1a   : > { %p723_p0 = scmp.ne.s32.totalorder %s107_s18, %s722_s30  ;;  %p731_p1 = scmp.lt.s32.totalorder %s722_s30, %s722_s30 }
  0x1c   : > { %p725_p2 = pnand %p723_p0, %p711_p9  ;;  %p732_p4 = por %p731_p1, %p730_p6 }
  0x1e   : > { %p726_p3 = pneg %p725_p2 }
  0x20   : > { %p733_p5 = pnand %p732_p4, %p726_p3 }
  0x22   : > { %736 = shalt.err (!%p733_p5)
}
  0x23   : > { %s808_s3 = smov 128   ;;  %s809_s4 = smov 8  }
  0x24   : > { %665 = dma.hbm_to_vmem [thread:$0]  (!%p869_p7), %s1013_s1, 256, %s107_s18, [#allocation5], %s808_s3, %s808_s3, %s809_s4  }
  0x25   : > { %p21_p1 = scmp.eq.s32.totalorder %s20_s22, 0  ;;  %p30_p4 = scmp.ne.s32.totalorder %s801_s11, %s797_s10 }
  0x26   : > { %p31_p5 = scmp.eq.s32.totalorder %s805_s12, 0  ;;  %p671_p8 = scmp.lt.s32.totalorder %s805_s12, 4 }
  0x27   : > { %s903_s7 = scalar_select %p21_p1, %s801_s11, %s23_s21  }
  0x28   : > { %p32_p9 = por %p31_p5, %p30_p4  ;;  %s120_s8 = sand.u32 1, %s801_s11  }
  0x29   : > { %s597_s9 = sshll.u32 %s120_s8, 5  ;;  %s615_s17 = sshll.u32 %s805_s12, 9 }
  0x2a   : > { %s910_s19 = scalar_lea.hbm %s1012_s0, %s615_s17  ;;  %s124_s18 = scalar_lea.vmem [#allocation2], %s597_s9 }
  0x2b   : > { %s131_s22 = sshll.u32 %s124_s18, 4  ;;  %p914_p7 = pnand %p671_p8, %p32_p9  ;;  %s912_s22 = int_to_ptr.vmem [resolvable:$true] %s131_s22 }
  0x2c   : > { %s918_s25 = scalar_lea.sflag [#allocation3], %s120_s8  ;;  %s737_s26 = scalar_lea.hbm %s910_s19, 512 }
  0x2d   : > { %p738_p10 = scmp.ne.s32.totalorder %s910_s19, %s737_s26  ;;  %p739_p11 = pneg %p914_p7 }
  0x2e   : > { %s742_s29 = scalar_lea.hbm %s1012_s0, 2048  ;;  %p743_p0 = scmp.lt.u32.totalorder %s910_s19, %s1012_s0 }
  0x2f   : > { %p740_p12 = pnand %p739_p11, %p738_p10  ;;  %p744_p2 = scmp.lt.u32.totalorder %s742_s29, %s737_s26 }
  0x30   : > { %p746_p6 = scmp.lt.u32.totalorder %s737_s26, %s910_s19 }
  0x31   : > { %p741_p13 = pneg %p740_p12  ;;  %p745_p3 = por %p744_p2, %p743_p0 }
  0x33   : > { %p747_p1 = por %p746_p6, %p745_p3 }
  0x35   : > { %p748_p4 = pnand %p747_p1, %p741_p13 }
  0x37   : > { %751 = shalt.err (!%p748_p4)
}
  0x38   : > { %s752_s6 = scalar_lea.vmem %s912_s22, 512  ;;  %s810_s8 = smov [#allocation2]  }
  0x39   : > { %p753_p5 = scmp.ne.s32.totalorder %s912_s22, %s752_s6  ;;  %s757_s9 = sshll.u32 %s810_s8, 4  ;;  %s758_s9 = int_to_ptr.vmem [resolvable:$false] %s757_s9 }
  0x3a   : > { %s759_s17 = scalar_lea.vmem %s758_s9, 1024  ;;  %p760_p10 = scmp.lt.s32.totalorder %s912_s22, %s758_s9 }
  0x3b   : > { %p755_p8 = pnand %p753_p5, %p739_p11  ;;  %p761_p12 = scmp.lt.s32.totalorder %s759_s17, %s752_s6 }
  0x3d   : > { %p756_p9 = pneg %p755_p8  ;;  %p762_p0 = por %p761_p12, %p760_p10 }
  0x3f   : > { %p763_p2 = pnand %p762_p0, %p756_p9 }
  0x41   : > { %766 = shalt.err (!%p763_p2)
}
  0x42   : > { %669 = dma.hbm_to_vmem [thread:$0]  (!%p914_p7), %s910_s19, 512, %s912_s22, %s918_s25, %s808_s3, %s808_s3, %s809_s4  }
  0x43   : > { %p1024_p11 = scmp.ne.s32.totalorder %s1021_s16, 0 }
  0x44   : > { %s145_s23 = sand.u32 (!%p1024_p11), 1, %s797_s10   ;;  %p1025_p13 = scmp.ne.s32.totalorder (!%p1024_p11), %s1020_s15, 0 }
  0x45   : > { %143 = sbr.rel (%p1024_p11) target bundleno = 431 (0x1af), region = 28  ;;  %s601_s24 = sshll.u32 (!%p1024_p11), %s145_s23, 5 }
  0x46   : > { %s146_s18 = scalar_lea.sflag (!%p1024_p11), [#allocation3], %s145_s23  ;;  %s149_s26 = scalar_lea.vmem (!%p1024_p11), [#allocation2], %s601_s24 }
  0x4c   : > { %784 = dma.done.wait (%p1025_p13), %s146_s18, 512  }
  0x4d   : > { %786 = vsyncadd (%p1025_p13), %s146_s18, 4294966784  ;;  %p1026_p3 = scmp.ne.s32.totalorder %s1019_s14, 0 }
  0x4f   : > { %788 = dma.done.wait (%p1026_p3), [#allocation5], 256  }
  0x50   : > { %790 = vsyncadd (%p1026_p3), [#allocation5], 4294967040  ;;  %v185_v0 = vlaneseq  ;;  %vm294_vm1 = vcmask 130048   ;;  %v292_v8 = vld [vmem:[#allocation4] sm:$0xff]  ;;  %v293_v9 = vld [vmem:[#allocation4 + $0x8] sm:$0xff]  ;;  %s603_s14 = sshll.u32 %s592_s13, 2 }
  0x51   : > { %v181_v10 = vld [vmem:[%s149_s26] sm:$0xff]  ;;  %v648_v13 = vpack.c.bf16 %v293_v9, %v292_v8  ;;  %v182_v14 = vld [vmem:[%s149_s26 + $0x8] sm:$0xff]  ;;  %v183_v18 = vld [vmem:[%s149_s26 + $0x10] sm:$0xff]  ;;  %p176_p7 = scmp.lt.s32.totalorder %s603_s14, 15  ;;  %s811_s16 = smov 32   ;;  %vm489_vm7 = vcmask 261120  }
  0x52   : > { %v186_v1 = vshrl.u32 %v185_v0, 7  ;;  %v246_v15 = vrot.slane %v181_v10, 7  ;;  %v255_v16 = vrot.slane %v181_v10, 1  ;;  %v276_v17 = vmul.f32 0.75, %v181_v10  ;;  %v184_v19 = vld [vmem:[%s149_s26 + $0x18] sm:$0xff] }
  0x53   : > { %v247_v20 = vrot.slane %v182_v14, 7  ;;  %v256_v21 = vrot.slane %v182_v14, 1  ;;  %v257_v23 = vrot.slane %v183_v18, 1  ;;  %653 = vmatprep.subr.bf16.mxu1 %v648_v13  ;;  %v277_v24 = vmul.f32 0.75, %v182_v14  ;;  %649 = vmatprep.subr.bf16.mxu0 %v648_v13  ;;  %s1038_s14 = smov (!%p176_p7, %s603_s14), 15 }
  0x54   : > { %v187_v2 = vadd.s32 8, %v186_v1  ;;  %v189_v3 = vadd.s32 24, %v186_v1  ;;  %v194_v4 = vand.u32 15, %v186_v1  ;;  %v188_v5 = vadd.s32 16, %v186_v1  ;;  %655 = vmatpush3.bf16.msra.mxu1 %v648_v13  ;;  %651 = vmatpush3.bf16.msra.mxu0 %v648_v13  ;;  %s604_s15 = sshll.u32 %s1038_s14, 3 }
  0x55   : > { %vm259_vm0 = vcmp.lt.s32.totalorder %v186_v1, 7  ;;  %vm250_vm2 = vcmp.lt.s32.totalorder %v186_v1, 1  ;;  %v258_v25 = vrot.slane %v184_v19, 1  ;;  %v278_v26 = vmul.f32 0.75, %v183_v18  ;;  %s179_s19 = scalar_lea.vmem %s1014_s2, %s604_s15 }
  0x56   : > { %v201_v6 = vand.u32 15, %v187_v2  ;;  %v215_v7 = vand.u32 15, %v189_v3  ;;  %vm960_vm3 = vcmp.eq.s32.totalorder %v194_v4, 0  ;;  %v208_v12 = vand.u32 15, %v188_v5 }
  0x57   : > { %v262_v28 = vsel %vm259_vm0, %v255_v16, %v256_v21  ;;  %v253_v29 = vsel %vm250_vm2, %v246_v15, %v247_v20  ;;  %v261_v30 = vsel %vm259_vm0, %v256_v21, %v257_v23  ;;  %v248_v31 = vrot.slane %v183_v18, 7 }
  0x58   : > { %vm964_vm4 = vcmp.eq.s32.totalorder %v201_v6, 15  ;;  %vm968_vm5 = vcmp.eq.s32.totalorder %v215_v7, 15  ;;  %v284_v32 = vmul.f32 0.25, %v262_v28  ;;  %v260_v34 = vsel %vm259_vm0, %v257_v23, %v258_v25 }
  0x59   : > { %v269_v33 = vsel %vm964_vm4, %v253_v29, %v261_v30  ;;  %v249_v35 = vrot.slane %v184_v19, 7  ;;  %v286_v37 = vmul.f32 0.25, %v260_v34  ;;  %v263_v38 = vsel %vm259_vm0, %v258_v25, %v255_v16 }
  0x5a   : > { %v285_v36 = vmul.f32 0.25, %v269_v33  ;;  %v279_v39 = vmul.f32 0.75, %v184_v19  ;;  %v288_v40 = vadd.f32 %v284_v32, %v276_v17  ;;  %v273_v43 = vmul.f32 0.25, %v253_v29 }
  0x5b   : > { %v251_v41 = vsel %vm250_vm2, %v248_v31, %v249_v35  ;;  %v254_v42 = vsel %vm250_vm2, %v249_v35, %v246_v15  ;;  %v290_v45 = vadd.f32 %v286_v37, %v278_v26  ;;  %vm240_vm6 = vcmp.eq.s32.totalorder %v208_v12, 0 }
  0x5c   : > { %v289_v44 = vadd.f32 %v285_v36, %v277_v24  ;;  %v271_v46 = vsel %vm968_vm5, %v251_v41, %v263_v38  ;;  %v264_v47 = vsel %vm960_vm3, %v262_v28, %v254_v42  ;;  %642 = vmatprep.mubr.msk.f32.mxu1 %vm294_vm1, %v288_v40  ;;  %v281_v50 = vadd.f32 %v277_v24, %v273_v43 }
  0x5d   : > { %v287_v48 = vmul.f32 0.25, %v271_v46  ;;  %v272_v49 = vmul.f32 0.25, %v264_v47  ;;  %v252_v51 = vsel %vm250_vm2, %v247_v20, %v248_v31  ;;  %v275_v52 = vmul.f32 0.25, %v251_v41 }
  0x5e   : > { %643 = vmatmul.mubr.msk.f32.vlgmr.msra.gmra.mrb[0].mxu1 %vm294_vm1, %v289_v44  ;;  %v266_v55 = vsel %vm240_vm6, %v260_v34, %v252_v51  ;;  %vm510_vm8 = vcmask 523520  }
  0x5f   : > { %645 = vmatprep.mubr.msk.f32.mxu1 %vm294_vm1, %v290_v45  ;;  %v291_v53 = vadd.f32 %v287_v48, %v279_v39  ;;  %v280_v54 = vadd.f32 %v276_v17, %v272_v49  ;;  %v274_v56 = vmul.f32 0.25, %v266_v55  ;;  %v283_v58 = vadd.f32 %v279_v39, %v275_v52 }
  0x61   : > { %632 = vmatprep.mubr.msk.f32.mxu0 %vm294_vm1, %v280_v54  ;;  %v282_v57 = vadd.f32 %v278_v26, %v274_v56 }
  0x62   : > { %646 = vmatmul.mubr.msk.f32.gmra.mrb[2].mxu1 %vm294_vm1, %v291_v53  ;;  %633 = vmatmul.mubr.msk.f32.vlgmr.msra.gmra.mrb[0].mxu0 %vm294_vm1, %v281_v50 }
  0x63   : > { %635 = vmatprep.mubr.msk.f32.mxu0 %vm294_vm1, %v282_v57 }
  0x66   : > { %636 = vmatmul.mubr.msk.f32.gmra.mrb[2].mxu0 %vm294_vm1, %v283_v58 }
 0x131   : > { %v644_v59 = vpop.f32.mrb[0].mxu1 }
 0x132   : > { %v470_v60 = vpop.f32.mrb[1].mxu1 }
 0x133   : > { %498 = vrot.lane.b32.xlu0 %v470_v60, %s811_s16 }
 0x135   : > { %v647_v61 = vpop.f32.mrb[2].mxu1  ;;  %v634_v62 = vpop.f32.mrb[0].mxu0 }
 0x136   : > { %v480_v63 = vpop.f32.mrb[3].mxu1  ;;  %491 = vst.msk [vmem:[%s179_s19 + $0x8] sm:$0xff] %vm489_vm7, %v634_v62  ;;  %v373_v0 = vpop.f32.mrb[1].mxu0 }
 0x137   : > { %500 = vrot.lane.b32.xlu0 %v644_v59, %s811_s16  ;;  %502 = vrot.lane.b32.xlu1 %v480_v63, %s811_s16  ;;  %490 = vst.msk [vmem:[%s179_s19] sm:$0xff] %vm489_vm7, %v373_v0 }
 0x139   : > { %v637_v1 = vpop.f32.mrb[2].mxu0 }
 0x13a   : > { %493 = vst.msk [vmem:[%s179_s19 + $0x18] sm:$0xff] %vm489_vm7, %v637_v1  ;;  %v383_v2 = vpop.f32.mrb[3].mxu0 }
 0x13b   : > { %504 = vrot.lane.b32.xlu1 %v647_v61, %s811_s16  ;;  %492 = vst.msk [vmem:[%s179_s19 + $0x10] sm:$0xff] %vm489_vm7, %v383_v2 }
 0x1a5   : > { %v499_v3 = vpop.permute.xlu0 %498 }
 0x1a6   : > { %511 = vst.msk [vmem:[%s179_s19] sm:$0xff] %vm510_vm8, %v499_v3 }
 0x1a9   : > { %v501_v4 = vpop.permute.xlu0 %500  ;;  %v503_v5 = vpop.permute.xlu1 %502 }
 0x1aa   : > { %512 = vst.msk [vmem:[%s179_s19 + $0x8] sm:$0xff] %vm510_vm8, %v501_v4  ;;  %513 = vst.msk [vmem:[%s179_s19 + $0x10] sm:$0xff] %vm510_vm8, %v503_v5 }
 0x1ad   : > { %v505_v6 = vpop.permute.xlu1 %504 }
 0x1ae   : > { %514 = vst.msk [vmem:[%s179_s19 + $0x18] sm:$0xff] %vm510_vm8, %v505_v6 }
 0x1af PF: > { %p13_p6 = scmp.ge.s32.totalorder %s874_s20, 6   ;;  %s1033_s9 = smov %s797_s10 }
 0x1b0   : > { %s1034_s10 = smov %s801_s11  ;;  %s1035_s11 = smov %s903_s7 }
 0x1b1   : > { %s1036_s12 = smov %s874_s20  ;;  %15 = sbr.rel (!%p13_p6) target bundleno = 4 (0x4), region = 72 }
 0x1b8   :  { %537 = vsyncpa [#allocation3], 1 }
 0x1b9   :  { %539 = vsyncpa [#allocation3 + $0x1], 1 }
 0x1ba   :  { %540 = vsyncpa [#allocation5], 1 }

</bundles_post_ra>
